<compile_context>
chip_gen: v6e
topology: v6e:2x2x1
jax: 0.10.0
libtpu: 0.0.40
codegen_flags: <defaults>
</compile_context>

<pallas_src>
import functools
import math

import jax
import jax.numpy as jnp
from jax import lax
from jax.experimental import pallas as pl
from jax.experimental.pallas import tpu as pltpu


def _vmem_limit_bytes():
    """Scoped-VMEM budget derived from the part (v5e/v6e: 128 MiB, v7x: 64 MiB)."""
    try:
        cap = pltpu.get_tpu_info().vmem_capacity_bytes
        return int(min(0.75 * cap, 100 * 1024 * 1024))
    except Exception:  # conservative fallback if the query is unavailable
        return 48 * 1024 * 1024


def _round_up(x, m):
    return ((x + m - 1) // m) * m


def _fit_tile(t, total):
    t = min(t, total)
    while total % t != 0:
        t //= 2
    return max(t, 1)


# ----------------------------------------------------------------------------
# Kernel 1: QKV projection, all heads per step, lane-dense bf16 outputs.
# ----------------------------------------------------------------------------
def _qkv_proj_kernel(x_ref, wq_ref, wk_ref, wv_ref, bq_ref, bk_ref, bv_ref,
                     q_ref, k_ref, v_ref):
    """One (batch, seq-tile) step.

    x_ref : (1, Ts, D) bf16 input tile (cast once in the wrapper)
    w*_ref: (D, D)     bf16 resident weights (Q pre-scaled by 1/sqrt(dh))
    b*_ref: (1, D)     f32  biases (Q pre-scaled)
    q/k/v : (1, Ts, D) bf16 lane-dense outputs; head h = columns [h*dh,(h+1)*dh)
    """
    x = x_ref[0]                                            # (Ts, D) bf16

    def proj(w_ref, b_ref):
        acc = jnp.dot(x, w_ref[...], preferred_element_type=jnp.float32)
        return (acc + b_ref[...]).astype(jnp.bfloat16)      # bias added in f32

    q_ref[0] = proj(wq_ref, bq_ref)
    k_ref[0] = proj(wk_ref, bk_ref)
    v_ref[0] = proj(wv_ref, bv_ref)


# ----------------------------------------------------------------------------
# Kernel 2: fused flash attention (online softmax) + output projection.
# ----------------------------------------------------------------------------
def _flash_attn_out_kernel(q_ref, k_ref, v_ref, wo_ref, bo_ref, y_ref,
                           m_sc, l_sc, acc_sc, *,
                           num_heads, head_dim, seq_len, k_tile, masked):
    """Grid = (B, q-tiles, k-tiles); the k axis is the ("arbitrary") reduction.

    q_ref : (1, Tq, D) bf16 (already scaled by 1/sqrt(dh))
    k/v   : (1, Tk, D) bf16
    wo_ref: (D, D)     bf16 resident output-projection weight
    bo_ref: (1, D)     f32
    y_ref : (1, Tq, D) out, resident across the k axis, written at the last k.
    Scratch: m_sc/l_sc (Tq, H) f32, acc_sc (Tq, D) f32.
    """
    ki = pl.program_id(2)

    @pl.when(ki == 0)
    def _():
        m_sc[...] = jnp.full_like(m_sc, -jnp.inf)
        l_sc[...] = jnp.zeros_like(l_sc)
        acc_sc[...] = jnp.zeros_like(acc_sc)

    q = q_ref[0]                                            # (Tq, D) bf16
    k = k_ref[0]                                            # (Tk, D) bf16
    v = v_ref[0]                                            # (Tk, D) bf16

    if masked:
        # Zero padding sits at the sequence tail; key position valid iff < seq_len.
        col = ki * k_tile + lax.broadcasted_iota(jnp.int32, (1, k_tile), 1)
        kmask = col < seq_len                               # (1, Tk)

    for h in range(num_heads):
        lo, hi = h * head_dim, (h + 1) * head_dim
        q_h = q[:, lo:hi]                                   # (Tq, dh) bf16
        k_h = k[:, lo:hi]                                   # (Tk, dh) bf16
        v_h = v[:, lo:hi]                                   # (Tk, dh) bf16

        # (Tq, Tk) f32 scores; 1/sqrt(dh) folded into q at projection time.
        s = lax.dot_general(q_h, k_h, (((1,), (1,)), ((), ())),
                            preferred_element_type=jnp.float32)
        if masked:
            s = jnp.where(kmask, s, -1e30)

        m_prev = m_sc[:, h:h + 1]
        m_new = jnp.maximum(m_prev, jnp.max(s, axis=-1, keepdims=True))
        alpha = jnp.exp(m_prev - m_new)                     # f32 (v5e-safe)
        p = jnp.exp(s - m_new)                              # f32
        l_sc[:, h:h + 1] = alpha * l_sc[:, h:h + 1] + jnp.sum(p, axis=-1,
                                                              keepdims=True)
        acc_sc[:, lo:hi] = alpha * acc_sc[:, lo:hi] + jnp.dot(
            p.astype(jnp.bfloat16), v_h, preferred_element_type=jnp.float32)
        m_sc[:, h:h + 1] = m_new

    @pl.when(ki == pl.num_programs(2) - 1)
    def _():
        # Normalize each head in place, then one full-depth (Tq,D)x(D,D) matmul
        # applies the output projection -> lane-dense, D-wide store.
        for h in range(num_heads):
            lo, hi = h * head_dim, (h + 1) * head_dim
            inv_l = pl.reciprocal(l_sc[:, h:h + 1], approx=True)   # EUP slot
            acc_sc[:, lo:hi] = acc_sc[:, lo:hi] * inv_l
        o = acc_sc[...].astype(jnp.bfloat16)                       # (Tq, D)
        y = jnp.dot(o, wo_ref[...], preferred_element_type=jnp.float32)
        y_ref[0] = (y + bo_ref[...]).astype(y_ref.dtype)


# ----------------------------------------------------------------------------
# Wrapper
# ----------------------------------------------------------------------------
def mhsa_pallas(x, w_qkv, b_qkv, w_out, b_out, num_heads,
                *, q_tile=256, k_tile=512, s_tile=256):
    """x: (B,S,D) f32; w_qkv: (D,3D); b_qkv: (3D,); w_out: (D,D); b_out: (D,)."""
    b, s, d = x.shape
    assert d % num_heads == 0
    dh = d // num_heads
    scale = 1.0 / math.sqrt(dh)
    vmem_limit = _vmem_limit_bytes()

    # ---- tiling / padding (never degenerate to a full (S,S) score tile) ----
    if s <= 128:
        s_pad = s
        tq = tk = ts = s
    else:
        s_pad = _round_up(s, 128)
        tq = _fit_tile(q_tile, s_pad)
        tk = _fit_tile(k_tile, s_pad)
        ts = _fit_tile(s_tile, s_pad)
    masked = s_pad != s

    x_p = x
    if masked:
        x_p = jnp.pad(x_p, ((0, 0), (0, s_pad - s), (0, 0)))
    x_p = x_p.astype(jnp.bfloat16)          # cast once; halves x HBM traffic

    # ---- parameter prep (torch column order [Q | K | V], heads contiguous) ----
    wq = (w_qkv[:, :d] * scale).astype(jnp.bfloat16)        # fold 1/sqrt(dh)
    wk = w_qkv[:, d:2 * d].astype(jnp.bfloat16)
    wv = w_qkv[:, 2 * d:].astype(jnp.bfloat16)
    bq = (b_qkv[:d] * scale).reshape(1, d)
    bk = b_qkv[d:2 * d].reshape(1, d)
    bv = b_qkv[2 * d:].reshape(1, d)
    w_o = w_out.astype(jnp.bfloat16)                        # rows are (head, dh)
    b_o = b_out.reshape(1, d)

    # ---- kernel 1: QKV projection (all heads per step; x read once) ----
    qkv_shape = jax.ShapeDtypeStruct((b, s_pad, d), jnp.bfloat16)
    q, k, v = pl.pallas_call(
        _qkv_proj_kernel,
        out_shape=(qkv_shape, qkv_shape, qkv_shape),
        grid=(b, s_pad // ts),
        in_specs=[
            pl.BlockSpec((1, ts, d), lambda bi, si: (bi, si, 0)),   # x
            pl.BlockSpec((d, d), lambda bi, si: (0, 0)),            # wq
            pl.BlockSpec((d, d), lambda bi, si: (0, 0)),            # wk
            pl.BlockSpec((d, d), lambda bi, si: (0, 0)),            # wv
            pl.BlockSpec((1, d), lambda bi, si: (0, 0)),            # bq
            pl.BlockSpec((1, d), lambda bi, si: (0, 0)),            # bk
            pl.BlockSpec((1, d), lambda bi, si: (0, 0)),            # bv
        ],
        out_specs=(
            pl.BlockSpec((1, ts, d), lambda bi, si: (bi, si, 0)),
            pl.BlockSpec((1, ts, d), lambda bi, si: (bi, si, 0)),
            pl.BlockSpec((1, ts, d), lambda bi, si: (bi, si, 0)),
        ),
        compiler_params=pltpu.CompilerParams(
            dimension_semantics=("parallel", "parallel"),
            vmem_limit_bytes=vmem_limit),
    )(x_p, wq, wk, wv, bq, bk, bv)

    # ---- kernel 2: fused flash attention + output projection ----
    kernel2 = functools.partial(
        _flash_attn_out_kernel, num_heads=num_heads, head_dim=dh,
        seq_len=s, k_tile=tk, masked=masked)
    y = pl.pallas_call(
        kernel2,
        out_shape=jax.ShapeDtypeStruct((b, s_pad, d), x.dtype),
        grid=(b, s_pad // tq, s_pad // tk),
        in_specs=[
            pl.BlockSpec((1, tq, d), lambda bi, qi, ki: (bi, qi, 0)),  # q
            pl.BlockSpec((1, tk, d), lambda bi, qi, ki: (bi, ki, 0)),  # k
            pl.BlockSpec((1, tk, d), lambda bi, qi, ki: (bi, ki, 0)),  # v
            pl.BlockSpec((d, d), lambda bi, qi, ki: (0, 0)),           # w_out
            pl.BlockSpec((1, d), lambda bi, qi, ki: (0, 0)),           # b_out
        ],
        out_specs=pl.BlockSpec((1, tq, d), lambda bi, qi, ki: (bi, qi, 0)),
        scratch_shapes=[
            pltpu.VMEM((tq, num_heads), jnp.float32),   # running max per head
            pltpu.VMEM((tq, num_heads), jnp.float32),   # running denom per head
            pltpu.VMEM((tq, d), jnp.float32),           # per-head output accum
        ],
        compiler_params=pltpu.CompilerParams(
            dimension_semantics=("parallel", "parallel", "arbitrary"),
            vmem_limit_bytes=vmem_limit),
    )(q, k, v, w_o, b_o)

    if masked:
        y = y[:, :s, :]
    return y


# ----------------------------------------------------------------------------
# Pure-JAX reference mirroring the PyTorch forward (mask=None path).
# ----------------------------------------------------------------------------
def mhsa_reference(x, w_qkv, b_qkv, w_out, b_out, num_heads):
    b, s, d = x.shape
    dh = d // num_heads
    qkv = x @ w_qkv + b_qkv                              # (b, s, 3d)
    qkv = qkv.reshape(b, s, 3, num_heads, dh)
    qkv = jnp.transpose(qkv, (0, 3, 2, 1, 4))            # (b, h, 3, s, dh)
    q, k, v = qkv[:, :, 0], qkv[:, :, 1], qkv[:, :, 2]   # (b, h, s, dh)
    scores = jnp.einsum("bhqd,bhkd->bhqk", q, k) / math.sqrt(dh)
    p = jax.nn.softmax(scores, axis=-1)
    y = jnp.einsum("bhqk,bhkd->bhqd", p, v)              # (b, h, s, dh)
    y = jnp.transpose(y, (0, 2, 1, 3)).reshape(b, s, d)
    return y @ w_out + b_out


if __name__ == "__main__":
    batch, seq, dim, num_heads = 2, 8, 32, 4

    key = jax.random.PRNGKey(0)
    kx, k1, k2, k3, k4 = jax.random.split(key, 5)

    x = jax.random.normal(kx, (batch, seq, dim), dtype=jnp.float32)

    # Deterministic parameters (nn.Linear shapes, stored transposed: (in, out)).
    w_qkv = 0.02 * jax.random.normal(k1, (dim, 3 * dim), dtype=jnp.float32)
    b_qkv = 0.02 * jax.random.normal(k2, (3 * dim,), dtype=jnp.float32)
    w_out = 0.02 * jax.random.normal(k3, (dim, dim), dtype=jnp.float32)
    b_out = 0.02 * jax.random.normal(k4, (dim,), dtype=jnp.float32)

    y = mhsa_pallas(x, w_qkv, b_qkv, w_out, b_out, num_heads)
    y = jax.block_until_ready(y)

    y_ref = mhsa_reference(x, w_qkv, b_qkv, w_out, b_out, num_heads)
    assert y.shape == (batch, seq, dim)
    # bf16 MXU operands + approx reciprocal -> looser tolerance than pure f32.
    assert jnp.allclose(y, y_ref, atol=2e-2, rtol=2e-2), "mismatch vs JAX reference"

    print("KERNEL_OK")
</pallas_src>

<mosaic_0001>
module attributes {stable_mosaic.version = 11 : i64} {
  func.func @_qkv_proj_kernel(%arg0: i32, %arg1: i32, %arg2: memref<1x8x32xbf16, #tpu.memory_space<vmem>>, %arg3: memref<32x32xbf16, #tpu.memory_space<vmem>>, %arg4: memref<32x32xbf16, #tpu.memory_space<vmem>>, %arg5: memref<32x32xbf16, #tpu.memory_space<vmem>>, %arg6: memref<1x32xf32, #tpu.memory_space<vmem>>, %arg7: memref<1x32xf32, #tpu.memory_space<vmem>>, %arg8: memref<1x32xf32, #tpu.memory_space<vmem>>, %arg9: memref<1x8x32xbf16, #tpu.memory_space<vmem>>, %arg10: memref<1x8x32xbf16, #tpu.memory_space<vmem>>, %arg11: memref<1x8x32xbf16, #tpu.memory_space<vmem>>) attributes {dimension_semantics = [#tpu.dimension_semantics<parallel>, #tpu.dimension_semantics<parallel>], iteration_bounds = array<i64: 2, 1>, scalar_prefetch = 0 : i64, scratch_operands = 0 : i64, tpu.core_type = #tpu.core_type<tc>, window_params = [{transform_indices = @transform_0, window_bounds = array<i64: 1, 8, 32>}, {pipeline_mode = #tpu.pipeline_mode<synchronous>, transform_indices = @transform_1, window_bounds = array<i64: 32, 32>}, {pipeline_mode = #tpu.pipeline_mode<synchronous>, transform_indices = @transform_2, window_bounds = array<i64: 32, 32>}, {pipeline_mode = #tpu.pipeline_mode<synchronous>, transform_indices = @transform_3, window_bounds = array<i64: 32, 32>}, {pipeline_mode = #tpu.pipeline_mode<synchronous>, transform_indices = @transform_4, window_bounds = array<i64: 1, 32>}, {pipeline_mode = #tpu.pipeline_mode<synchronous>, transform_indices = @transform_5, window_bounds = array<i64: 1, 32>}, {pipeline_mode = #tpu.pipeline_mode<synchronous>, transform_indices = @transform_6, window_bounds = array<i64: 1, 32>}, {transform_indices = @transform_7, window_bounds = array<i64: 1, 8, 32>}, {transform_indices = @transform_8, window_bounds = array<i64: 1, 8, 32>}, {transform_indices = @transform_9, window_bounds = array<i64: 1, 8, 32>}]} {
    %c0 = arith.constant 0 : index
    %c0_0 = arith.constant 0 : index
    %c0_1 = arith.constant 0 : index
    %0 = vector.load %arg2[%c0, %c0_0, %c0_1] : memref<1x8x32xbf16, #tpu.memory_space<vmem>>, vector<1x8x32xbf16>
    %1 = vector.shape_cast %0 : vector<1x8x32xbf16> to vector<8x32xbf16>
    %c0_2 = arith.constant 0 : index
    %c0_3 = arith.constant 0 : index
    %2 = vector.load %arg3[%c0_2, %c0_3] : memref<32x32xbf16, #tpu.memory_space<vmem>>, vector<32x32xbf16>
    %cst = arith.constant dense<0.000000e+00> : vector<8x32xf32>
    %3 = tpu.matmul %1, %2, %cst {dimension_numbers = #tpu.dot_dimension_numbers<[1], [0], [0], [1], [0, 0, 1, 1], [], []>} : vector<8x32xbf16>, vector<32x32xbf16>, vector<8x32xf32> -> vector<8x32xf32>
    %c0_4 = arith.constant 0 : index
    %c0_5 = arith.constant 0 : index
    %4 = vector.load %arg6[%c0_4, %c0_5] : memref<1x32xf32, #tpu.memory_space<vmem>>, vector<1x32xf32>
    %5 = vector.broadcast %4 : vector<1x32xf32> to vector<8x32xf32>
    %6 = arith.addf %3, %5 : vector<8x32xf32>
    %7 = arith.truncf %6 : vector<8x32xf32> to vector<8x32xbf16>
    %c0_6 = arith.constant 0 : index
    %c0_7 = arith.constant 0 : index
    %c0_8 = arith.constant 0 : index
    %8 = vector.load %arg9[%c0_6, %c0_7, %c0_8] : memref<1x8x32xbf16, #tpu.memory_space<vmem>>, vector<1x8x32xbf16>
    %9 = vector.shape_cast %8 : vector<1x8x32xbf16> to vector<8x32xbf16>
    %10 = vector.shape_cast %7 : vector<8x32xbf16> to vector<1x8x32xbf16>
    tpu.vector_store %arg9[%c0_6, %c0_7, %c0_8], %10 {strides = array<i32>} : memref<1x8x32xbf16, #tpu.memory_space<vmem>>, vector<1x8x32xbf16>,
    %c0_9 = arith.constant 0 : index
    %c0_10 = arith.constant 0 : index
    %11 = vector.load %arg4[%c0_9, %c0_10] : memref<32x32xbf16, #tpu.memory_space<vmem>>, vector<32x32xbf16>
    %cst_11 = arith.constant dense<0.000000e+00> : vector<8x32xf32>
    %12 = tpu.matmul %1, %11, %cst_11 {dimension_numbers = #tpu.dot_dimension_numbers<[1], [0], [0], [1], [0, 0, 1, 1], [], []>} : vector<8x32xbf16>, vector<32x32xbf16>, vector<8x32xf32> -> vector<8x32xf32>
    %c0_12 = arith.constant 0 : index
    %c0_13 = arith.constant 0 : index
    %13 = vector.load %arg7[%c0_12, %c0_13] : memref<1x32xf32, #tpu.memory_space<vmem>>, vector<1x32xf32>
    %14 = vector.broadcast %13 : vector<1x32xf32> to vector<8x32xf32>
    %15 = arith.addf %12, %14 : vector<8x32xf32>
    %16 = arith.truncf %15 : vector<8x32xf32> to vector<8x32xbf16>
    %c0_14 = arith.constant 0 : index
    %c0_15 = arith.constant 0 : index
    %c0_16 = arith.constant 0 : index
    %17 = vector.load %arg10[%c0_14, %c0_15, %c0_16] : memref<1x8x32xbf16, #tpu.memory_space<vmem>>, vector<1x8x32xbf16>
    %18 = vector.shape_cast %17 : vector<1x8x32xbf16> to vector<8x32xbf16>
    %19 = vector.shape_cast %16 : vector<8x32xbf16> to vector<1x8x32xbf16>
    tpu.vector_store %arg10[%c0_14, %c0_15, %c0_16], %19 {strides = array<i32>} : memref<1x8x32xbf16, #tpu.memory_space<vmem>>, vector<1x8x32xbf16>,
    %c0_17 = arith.constant 0 : index
    %c0_18 = arith.constant 0 : index
    %20 = vector.load %arg5[%c0_17, %c0_18] : memref<32x32xbf16, #tpu.memory_space<vmem>>, vector<32x32xbf16>
    %cst_19 = arith.constant dense<0.000000e+00> : vector<8x32xf32>
    %21 = tpu.matmul %1, %20, %cst_19 {dimension_numbers = #tpu.dot_dimension_numbers<[1], [0], [0], [1], [0, 0, 1, 1], [], []>} : vector<8x32xbf16>, vector<32x32xbf16>, vector<8x32xf32> -> vector<8x32xf32>
    %c0_20 = arith.constant 0 : index
    %c0_21 = arith.constant 0 : index
    %22 = vector.load %arg8[%c0_20, %c0_21] : memref<1x32xf32, #tpu.memory_space<vmem>>, vector<1x32xf32>
    %23 = vector.broadcast %22 : vector<1x32xf32> to vector<8x32xf32>
    %24 = arith.addf %21, %23 : vector<8x32xf32>
    %25 = arith.truncf %24 : vector<8x32xf32> to vector<8x32xbf16>
    %c0_22 = arith.constant 0 : index
    %c0_23 = arith.constant 0 : index
    %c0_24 = arith.constant 0 : index
    %26 = vector.load %arg11[%c0_22, %c0_23, %c0_24] : memref<1x8x32xbf16, #tpu.memory_space<vmem>>, vector<1x8x32xbf16>
    %27 = vector.shape_cast %26 : vector<1x8x32xbf16> to vector<8x32xbf16>
    %28 = vector.shape_cast %25 : vector<8x32xbf16> to vector<1x8x32xbf16>
    tpu.vector_store %arg11[%c0_22, %c0_23, %c0_24], %28 {strides = array<i32>} : memref<1x8x32xbf16, #tpu.memory_space<vmem>>, vector<1x8x32xbf16>,
    return
  }
  func.func @transform_0(%arg0: i32, %arg1: i32) -> (i32, i32, i32) {
    %c0_i32 = arith.constant 0 : i32
    %c0_i32_0 = arith.constant 0 : i32
    return %arg0, %arg1, %c0_i32 : i32, i32, i32
  }
  func.func @transform_1(%arg0: i32, %arg1: i32) -> (i32, i32) {
    %c0_i32 = arith.constant 0 : i32
    %c0_i32_0 = arith.constant 0 : i32
    %c0_i32_1 = arith.constant 0 : i32
    return %c0_i32, %c0_i32_0 : i32, i32
  }
  func.func @transform_2(%arg0: i32, %arg1: i32) -> (i32, i32) {
    %c0_i32 = arith.constant 0 : i32
    %c0_i32_0 = arith.constant 0 : i32
    %c0_i32_1 = arith.constant 0 : i32
    return %c0_i32, %c0_i32_0 : i32, i32
  }
  func.func @transform_3(%arg0: i32, %arg1: i32) -> (i32, i32) {
    %c0_i32 = arith.constant 0 : i32
    %c0_i32_0 = arith.constant 0 : i32
    %c0_i32_1 = arith.constant 0 : i32
    return %c0_i32, %c0_i32_0 : i32, i32
  }
  func.func @transform_4(%arg0: i32, %arg1: i32) -> (i32, i32) {
    %c0_i32 = arith.constant 0 : i32
    %c0_i32_0 = arith.constant 0 : i32
    %c0_i32_1 = arith.constant 0 : i32
    return %c0_i32, %c0_i32_0 : i32, i32
  }
  func.func @transform_5(%arg0: i32, %arg1: i32) -> (i32, i32) {
    %c0_i32 = arith.constant 0 : i32
    %c0_i32_0 = arith.constant 0 : i32
    %c0_i32_1 = arith.constant 0 : i32
    return %c0_i32, %c0_i32_0 : i32, i32
  }
  func.func @transform_6(%arg0: i32, %arg1: i32) -> (i32, i32) {
    %c0_i32 = arith.constant 0 : i32
    %c0_i32_0 = arith.constant 0 : i32
    %c0_i32_1 = arith.constant 0 : i32
    return %c0_i32, %c0_i32_0 : i32, i32
  }
  func.func @transform_7(%arg0: i32, %arg1: i32) -> (i32, i32, i32) {
    %c0_i32 = arith.constant 0 : i32
    %c0_i32_0 = arith.constant 0 : i32
    return %arg0, %arg1, %c0_i32 : i32, i32, i32
  }
  func.func @transform_8(%arg0: i32, %arg1: i32) -> (i32, i32, i32) {
    %c0_i32 = arith.constant 0 : i32
    %c0_i32_0 = arith.constant 0 : i32
    return %arg0, %arg1, %c0_i32 : i32, i32, i32
  }
  func.func @transform_9(%arg0: i32, %arg1: i32) -> (i32, i32, i32) {
    %c0_i32 = arith.constant 0 : i32
    %c0_i32_0 = arith.constant 0 : i32
    return %arg0, %arg1, %c0_i32 : i32, i32, i32
  }
}

</mosaic_0001>

<bundles_post_ra>
// kernel: tpu_custom_call.1
= control target key start
LH: loop header
LB: loop body
LE: loop exit
PB: predicated region body
PF: predicated region fallthrough
CT: control target
= control target key end

     0   :  { %s1633_s0 = inlined_call_operand.hbm [shape: bf16[2,8,32], index: 0, kind: input, shape index: {}]   ;;  %s1634_s1 = inlined_call_operand.hbm [shape: bf16[32,32], index: 1, kind: input, shape index: {}]   ;;  %s1635_s2 = inlined_call_operand.hbm [shape: bf16[32,32], index: 2, kind: input, shape index: {}]   ;;  %s1636_s3 = inlined_call_operand.hbm [shape: bf16[32,32], index: 3, kind: input, shape index: {}]   ;;  %s1637_s4 = inlined_call_operand.vmem [shape: f32[1,32], index: 4, kind: input, shape index: {}]   ;;  %s1638_s5 = inlined_call_operand.vmem [shape: f32[1,32], index: 5, kind: input, shape index: {}]   ;;  %s1639_s6 = inlined_call_operand.vmem [shape: f32[1,32], index: 6, kind: input, shape index: {}]   ;;  %s1640_s7 = inlined_call_operand.hbm [shape: bf16[2,8,32], index: 7, kind: output, shape index: {0}]   ;;  %s1641_s8 = inlined_call_operand.hbm [shape: bf16[2,8,32], index: 8, kind: output, shape index: {1}]   ;;  %s1642_s9 = inlined_call_operand.hbm [shape: bf16[2,8,32], index: 9, kind: output, shape index: {2}]  }
   0x1   :  { %1648 = sst [smem:[#allocation21_spill]] %s1634_s1 }
   0x2   :  { %1649 = sst [smem:[#allocation22_spill]] %s1635_s2 }
   0x3   :  { %1650 = sst [smem:[#allocation23_spill]] %s1636_s3 }
   0x4   :  { %15 = vsyncpa [#allocation3], 0 }
   0x5   :  { %17 = vsyncpa [#allocation3 + $0x1], 0 }
   0x6   :  { %18 = vsyncpa [#allocation6], 0 }
   0x7   :  { %19 = vsyncpa [#allocation9], 0 }
   0x8   :  { %20 = vsyncpa [#allocation4], 0 }
   0x9   :  { %22 = vsyncpa [#allocation4 + $0x1], 0 }
   0xa   :  { %23 = vsyncpa [#allocation12], 0 }
   0xb   :  { %25 = vsyncpa [#allocation12 + $0x1], 0  ;;  %s1354_s30 = smov 0   ;;  %s1356_s10 = smov 0  }
   0xc   :  { %s1358_s11 = smov 0   ;;  %s1360_s12 = smov 0  }
   0xd   :  { %s1362_s13 = smov 0   ;;  %s1364_s14 = smov 0  }
   0xe LB: > { %s1385_s15 = sadd.s32 4294967295, %s1291_s14   ;;  %s1644_s16 = sadd.s32 4294967294, %s1291_s14   ;;  %s1291_s14 = sphi %s1364_s14, %s31_s14   ;;  %s1287_s13 = sphi %s1362_s13, %s1678_s13   ;;  %s1283_s12 = sphi %s1360_s12, %s1677_s12   ;;  %s1279_s11 = sphi %s1358_s11, %s1676_s11   ;;  %s1275_s10 = sphi %s1356_s10, %s1675_s10   ;;  %s1271_s30 = sphi %s1354_s30, %s1674_s30  }
   0xf   : > { %p65_p0 = scmp.ne.s32.totalorder %s1275_s10, %s1271_s30  ;;  %p1643_p1 = scmp.eq.s32.totalorder %s1385_s15, 0 }
  0x10   : > { %p223_p3 = scmp.eq.s32.totalorder %s1644_s16, 1  ;;  %p860_p5 = scmp.ge.s32.totalorder %s1291_s14, 1 }
  0x11   : > { %p1396_p4 = por %p1643_p1, %p65_p0  ;;  %p286_p7 = scmp.lt.s32.totalorder %s1291_s14, 3 }
  0x12   : > { %p1401_p6 = por %p223_p3, %p65_p0  ;;  %s1293_s20 = smov [#allocation5]  }
  0x13   : > { %s1651_s17 = scalar_select %p1396_p4, 1, 0 }
  0x14   : > { %s1652_s18 = scalar_select %p1401_p6, 1, 0 }
  0x15   : > { %p1406_p8 = pnand %p860_p5, %p286_p7  ;;  %s298_s21 = sshll.u32 %s1293_s20, 4  ;;  %s299_s21 = int_to_ptr.vmem [resolvable:$true] %s298_s21 }
  0x16   : > { %1653 = sst [smem:[#allocation19_spill]] %s1652_s18  ;;  %s1294_s23 = smov [#allocation7]  }
  0x17   : > { %p948_p9 = pneg %p1406_p8  ;;  %s311_s24 = sshll.u32 %s1294_s23, 4  ;;  %s312_s24 = int_to_ptr.vmem [resolvable:$true] %s311_s24 }
  0x18   : > { %s1295_s25 = smov [#allocation8]   ;;  %s1052_s27 = scalar_lea.vmem %s299_s21, 256 }
  0x19   : > { %p1415_p11 = pnand %p948_p9, %p1643_p1  ;;  %s324_s26 = sshll.u32 %s1295_s25, 4  ;;  %s325_s26 = int_to_ptr.vmem [resolvable:$true] %s324_s26 }
  0x1a   : > { %p1053_p13 = scmp.ne.s32.totalorder %s299_s21, %s1052_s27  ;;  %p1060_p5 = scmp.lt.s32.totalorder %s299_s21, %s299_s21 }
  0x1b   : > { %p1043_p12 = pneg %p1415_p11  ;;  %p1061_p7 = scmp.lt.s32.totalorder %s1052_s27, %s1052_s27 }
  0x1d   : > { %p1055_p0 = pnand %p1053_p13, %p1043_p12  ;;  %p1062_p9 = por %p1061_p7, %p1060_p5 }
  0x1f   : > { %p1056_p3 = pneg %p1055_p0 }
  0x21   : > { %p1063_p10 = pnand %p1062_p9, %p1056_p3 }
  0x23   : > { %1066 = shalt.err (!%p1063_p10)
}
  0x24   : > { %s1296_s28 = smov 64   ;;  %s1297_s29 = smov 4  }
  0x25   : > { %s1656_s1 = sld [smem:[#allocation21_spill]]  ;;  %s1078_s25 = scalar_lea.vmem %s312_s24, 256 }
  0x26   : > { %p1079_p1 = scmp.ne.s32.totalorder %s312_s24, %s1078_s25  ;;  %p1086_p2 = scmp.lt.s32.totalorder %s312_s24, %s312_s24 }
  0x27   : > { %p1087_p6 = scmp.lt.s32.totalorder %s1078_s25, %s1078_s25 }
  0x28   : > { %p1081_p13 = pnand %p1079_p1, %p1043_p12 }
  0x29   : > { %p1088_p5 = por %p1087_p6, %p1086_p2 }
  0x2a   : > { %p1082_p0 = pneg %p1081_p13 }
  0x2b   : > { %951 = dma.hbm_to_vmem [thread:$0]  (!%p1415_p11), %s1656_s1, 256, %s299_s21, [#allocation6], %s1296_s28, %s1296_s28, %s1297_s29  }
  0x2c   : > { %p1089_p3 = pnand %p1088_p5, %p1082_p0 }
  0x2e   : > { %1092 = shalt.err (!%p1089_p3)
}
  0x2f   : > { %s1657_s2 = sld [smem:[#allocation22_spill]]  ;;  %s1104_s21 = scalar_lea.vmem %s325_s26, 256 }
  0x30   : > { %p1105_p10 = scmp.ne.s32.totalorder %s325_s26, %s1104_s21  ;;  %p1112_p9 = scmp.lt.s32.totalorder %s325_s26, %s325_s26 }
  0x31   : > { %p1113_p13 = scmp.lt.s32.totalorder %s1104_s21, %s1104_s21 }
  0x32   : > { %p1107_p7 = pnand %p1105_p10, %p1043_p12 }
  0x33   : > { %p1114_p4 = por %p1113_p13, %p1112_p9 }
  0x34   : > { %p1108_p1 = pneg %p1107_p7 }
  0x35   : > { %954 = dma.hbm_to_vmem [thread:$0]  (!%p1415_p11), %s1657_s2, 256, %s312_s24, [#allocation6], %s1296_s28, %s1296_s28, %s1297_s29  }
  0x36   : > { %p1115_p2 = pnand %p1114_p4, %p1108_p1 }
  0x38   : > { %1118 = shalt.err (!%p1115_p2)
}
  0x39   : > { %s1658_s3 = sld [smem:[#allocation23_spill]]  ;;  %s52_s16 = sadd.s32 1, %s1279_s11 }
  0x3a   : > { %s43_s24 = sadd.s32 1, %s1287_s13  ;;  %p59_p4 = scmp.ne.s32.totalorder %s1279_s11, %s1275_s10 }
  0x3b   : > { %p45_p6 = scmp.ge.s32.totalorder %s43_s24, 2  ;;  %p60_p12 = scmp.eq.s32.totalorder %s1291_s14, 0 }
  0x3c   : > { %p1659_p0 = scmp.eq.s32.totalorder %s1385_s15, 1  ;;  %p975_p3 = scmp.lt.s32.totalorder %s1291_s14, 2 }
  0x3d   : > { %s1680_s24 = smov (%p45_p6, %s43_s24), 0  ;;  %p61_p10 = por %p60_p12, %p59_p4 }
  0x3e   : > { %p1452_p5 = por %p1659_p0, %p59_p4  ;;  %1661 = sst [smem:[#allocation20_spill]] %s1680_s24 }
  0x3f   : > { %957 = dma.hbm_to_vmem [thread:$0]  (!%p1415_p11), %s1658_s3, 256, %s325_s26, [#allocation9], %s1296_s28, %s1296_s28, %s1297_s29  }
  0x40   : > { %s347_s25 = sand.u32 1, %s1279_s11   ;;  %s47_s27 = ssub.s32 %s1287_s13, %s1680_s24 }
  0x41   : > { %p50_p7 = scmp.eq.s32.totalorder %s47_s27, 0  ;;  %s865_s26 = sshll.u32 %s347_s25, 2 }
  0x42   : > { %s866_s28 = sshll.u32 %s1287_s13, 6  ;;  %s351_s1 = scalar_lea.vmem [#allocation2], %s865_s26 }
  0x43   : > { %s1464_s29 = scalar_select %p50_p7, %s1279_s11, %s52_s16  }
  0x44   : > { %s357_s23 = scalar_lea.hbm %s1633_s0, %s866_s28  ;;  %s359_s2 = sshll.u32 %s351_s1, 4  ;;  %s360_s2 = int_to_ptr.vmem [resolvable:$true] %s359_s2 }
  0x45   : > { %p1471_p11 = pnand %p975_p3, %p61_p10  ;;  %s348_s18 = scalar_lea.sflag [#allocation3], %s347_s25 }
  0x46   : > { %s1132_s27 = scalar_lea.vmem %s360_s2, 64  ;;  %s1298_s16 = smov [#allocation2]  }
  0x47   : > { %p1121_p1 = pneg %p1471_p11  ;;  %p1133_p9 = scmp.ne.s32.totalorder %s360_s2, %s1132_s27 }
  0x48   : > { %s1137_s24 = sshll.u32 %s1298_s16, 4  ;;  %s1138_s24 = int_to_ptr.vmem [resolvable:$false] %s1137_s24 }
  0x49   : > { %p1135_p13 = pnand %p1133_p9, %p1121_p1  ;;  %s1139_s28 = scalar_lea.vmem %s1138_s24, 128 }
  0x4a   : > { %p1140_p4 = scmp.lt.s32.totalorder %s360_s2, %s1138_s24  ;;  %p1141_p6 = scmp.lt.s32.totalorder %s1139_s28, %s1132_s27 }
  0x4b   : > { %p1136_p2 = pneg %p1135_p13 }
  0x4c   : > { %p1142_p12 = por %p1141_p6, %p1140_p4 }
  0x4e   : > { %p1143_p0 = pnand %p1142_p12, %p1136_p2 }
  0x50   : > { %1146 = shalt.err (!%p1143_p0)
}
  0x51   : > { %961 = dma.hbm_to_vmem [thread:$0]  (!%p1471_p11), %s357_s23, 64, %s360_s2, %s348_s18  }
  0x52   : > { %368 = sbr.rel (%p1406_p8) target bundleno = 362 (0x16a), region = 48  ;;  %s1482_s1 = sand.u32 (!%p1406_p8), 1, %s1275_s10  }
  0x53   : > { %s1485_s25 = sshll.u32 (!%p1406_p8), %s1482_s1, 2  ;;  %s371_s24 = scalar_lea.sflag (!%p1406_p8), [#allocation3], %s1482_s1 }
  0x54   : > { %s374_s26 = scalar_lea.vmem (!%p1406_p8), [#allocation2], %s1485_s25  ;;  %p1663_p3 = scmp.ne.s32.totalorder (!%p1406_p8), %s1651_s17, 0 }
  0x57   : > { %1250 = dma.done.wait (%p1663_p3), %s371_s24, 64  }
  0x58   : > { %1252 = vsyncadd (%p1663_p3), %s371_s24, 4294967232  ;;  %p1664_p10 = scmp.eq.s32.totalorder %s1385_s15, 0 }
  0x5a   : > { %1254 = dma.done.wait (%p1664_p10), [#allocation6], 512   ;;  %p1665_p8 = pmov %p1664_p10 }
  0x5c   : > { %1256 = vsyncadd (%p1665_p8), [#allocation6], 4294966784  ;;  %p1666_p7 = pmov %p1665_p8 }
  0x5e   : > { %1258 = dma.done.wait (%p1666_p7), [#allocation9], 256   ;;  %p1667_p11 = pmov %p1666_p7 }
  0x5f   : > { %v1299_v0 = vmov 0.0   ;;  %vm1300_vm0 = vmmov 0   ;;  %v1035_v1 = vld [vmem:[#allocation5 + $0x8] sm:$0xff]   ;;  %v1036_v2 = vld [vmem:[#allocation7 + $0x8] sm:$0xff]   ;;  %v1037_v3 = vld [vmem:[#allocation5] sm:$0xff]   ;;  %vm456_vm1 = vcmask 261120  }
  0x60   : > { %1260 = vsyncadd (%p1667_p11), [#allocation9], 4294967040  ;;  %904 = vmatprep.subr.bf16.mxu0 %v1299_v0  ;;  %912 = vmatprep.subr.bf16.mxu1 %v1299_v0  ;;  %v1038_v4 = vld [vmem:[#allocation7] sm:$0xff]   ;;  %v432_v5 = vld [vmem:[%s374_s26] sm:$0xf]  ;;  %s1512_s21 = sshll.u32 %s1283_s12, 6 }
  0x61   : > { %908 = vmatprep.mubr.msk.bf16.mxu0 %vm1300_vm0, %v1299_v0  ;;  %916 = vmatprep.mubr.msk.bf16.mxu1 %vm1300_vm0, %v1299_v0  ;;  %v1039_v6 = vld [vmem:[#allocation8 + $0x8] sm:$0xff]   ;;  %v1040_v7 = vld [vmem:[#allocation8] sm:$0xff]   ;;  %v875_v8 = vld [vmem:[%s1637_s4] ss:$0 sm:$0xff]  ;;  %s416_s20 = scalar_lea.vmem [#allocation10], %s1485_s25  ;;  %s423_s27 = scalar_lea.vmem [#allocation11], %s1485_s25 }
  0x62   : > { %905 = vmatpush3.bf16.msra.mxu0 %v1035_v1  ;;  %913 = vmatpush3.bf16.msra.mxu1 %v1036_v2  ;;  %v879_v9 = vld [vmem:[%s1638_s5] ss:$0 sm:$0xff]  ;;  %s658_s23 = sshll.u32 %s416_s20, 4  ;;  %s672_s16 = sshll.u32 %s423_s27, 4  ;;  %vm501_vm2 = vcmask 257024   ;;  %s1522_s23 = int_to_ptr.vmem [resolvable:$true] %s658_s23  ;;  %s1530_s16 = int_to_ptr.vmem [resolvable:$true] %s672_s16 }
  0x63   : > { %906 = vmatprep.subr.bf16.mxu0 %v1299_v0  ;;  %914 = vmatprep.subr.bf16.mxu1 %v1299_v0  ;;  %s1520_s12 = scalar_lea.hbm %s1640_s7, %s1512_s21  ;;  %s1528_s3 = scalar_lea.hbm %s1641_s8, %s1512_s21  ;;  %v883_v21 = vld [vmem:[%s1639_s6] ss:$0 sm:$0xff] }
  0x64   : > { %s634_s28 = scalar_lea.sflag [#allocation4], %s1482_s1  ;;  %s1147_s24 = scalar_lea.vmem %s1522_s23, 64 }
  0x65   : > { %p1148_p1 = scmp.ne.s32.totalorder %s1522_s23, %s1147_s24  ;;  %s1301_s26 = smov [#allocation10]  }
  0x66   : > { %907 = vmatpush3.bf16.msra.mxu0 %v1037_v3  ;;  %915 = vmatpush3.bf16.msra.mxu1 %v1038_v4  ;;  %s1151_s2 = sshll.u32 %s1301_s26, 4  ;;  %s1152_s2 = int_to_ptr.vmem [resolvable:$false] %s1151_s2 }
  0x67   : > { %920 = vmatprep.subr.bf16.mxu0 %v1299_v0  ;;  %p1149_p9 = pnand %p1148_p1, %p1452_p5  ;;  %s1153_s19 = scalar_lea.vmem %s1152_s2, 128 }
  0x68   : > { %p1154_p2 = scmp.lt.s32.totalorder %s1522_s23, %s1152_s2  ;;  %p1155_p4 = scmp.lt.s32.totalorder %s1153_s19, %s1147_s24 }
  0x69   : > { %909 = vmatmul.mubr.msk.bf16.vlgmr.msra.gmra.mxu0 %vm456_vm1, %v432_v5  ;;  %917 = vmatmul.mubr.msk.bf16.vlgmr.msra.gmra.mxu1 %vm456_vm1, %v432_v5  ;;  %p1150_p13 = pneg %p1149_p9 }
  0x6a   : > { %921 = vmatpush3.bf16.msra.mxu0 %v1039_v6  ;;  %924 = vmatprep.mubr.msk.bf16.mxu0 %vm1300_vm0, %v1299_v0  ;;  %p1156_p6 = por %p1155_p4, %p1154_p2 }
  0x6b   : > { %922 = vmatprep.subr.bf16.mxu0 %v1299_v0 }
  0x6c   : > { %p1157_p12 = pnand %p1156_p6, %p1150_p13 }
  0x6e   : > { %923 = vmatpush3.bf16.msra.mxu0 %v1040_v7 }
  0x71   : > { %925 = vmatmul.mubr.msk.bf16.vlgmr.msra.gmra.mxu0 %vm456_vm1, %v432_v5 }
 0x129   : > { %v494_v10 = vpop.f32.mrf.mxu0  ;;  %v560_v12 = vpop.f32.mrf.mxu1 }
 0x12a   : > { %v495_v11 = vadd.f32 %v875_v8, %v494_v10  ;;  %v561_v14 = vadd.f32 %v879_v9, %v560_v12 }
 0x12b   : > { %v910_v13 = vpop.f32.mrf.mxu0  ;;  %v918_v16 = vpop.f32.mrf.mxu1 }
 0x12c   : > { %v500_v15 = vpack.c.bf16 %v495_v11, %v495_v11  ;;  %v566_v17 = vpack.c.bf16 %v561_v14, %v561_v14 }
 0x12d   : > { %v497_v18 = vpop.f32.mrf.mxu0  ;;  %v563_v19 = vpop.f32.mrf.mxu1 }
 0x12e   : > { %502 = vst.msk [vmem:[%s416_s20] sm:$0xf] %vm501_vm2, %v500_v15  ;;  %567 = vst.msk [vmem:[%s423_s27] sm:$0xf] %vm501_vm2, %v566_v17 }
 0x12f   : > { %v911_v20 = vpop.f32.mrf.mxu0 }
 0x130   : > { %1160 = shalt.err (!%p1157_p12)
}
 0x131   : > { %s1161_s20 = scalar_lea.hbm %s1520_s12, 64  ;;  %s1165_s17 = scalar_lea.hbm %s1640_s7, 128 }
 0x132   : > { %p1162_p0 = scmp.ne.s32.totalorder %s1520_s12, %s1161_s20  ;;  %p1166_p8 = scmp.lt.s32.totalorder %s1520_s12, %s1640_s7 }
 0x133   : > { %p1167_p7 = scmp.lt.s32.totalorder %s1165_s17, %s1161_s20 }
 0x134   : > { %p1163_p3 = pnand %p1162_p0, %p1452_p5 }
 0x135   : > { %p1168_p11 = por %p1167_p7, %p1166_p8 }
 0x136   : > { %p1164_p10 = pneg %p1163_p3 }
 0x138   : > { %p1169_p1 = pnand %p1168_p11, %p1164_p10 }
 0x13a   : > { %1172 = shalt.err (!%p1169_p1)
}
 0x13b   : > { %942 = dma.vmem_to_hbm [thread:$0]  (%p1452_p5), %s1522_s23, 64, %s1520_s12, %s634_s28   ;;  %v919_v22 = vpop.f32.mrf.mxu1 }
 0x13c   : > { %s1668_s19 = sand.u32 1, %s1385_s15   ;;  %s1173_s2 = scalar_lea.vmem %s1530_s16, 64 }
 0x13d   : > { %s1560_s24 = scalar_lea.sflag [#allocation12], %s1668_s19  ;;  %p1174_p9 = scmp.ne.s32.totalorder %s1530_s16, %s1173_s2 }
 0x13e   : > { %s1302_s20 = smov [#allocation11]  }
 0x13f   : > { %p1175_p13 = pnand %p1174_p9, %p1452_p5  ;;  %s1177_s1 = sshll.u32 %s1302_s20, 4  ;;  %s1178_s1 = int_to_ptr.vmem [resolvable:$false] %s1177_s1 }
 0x140   : > { %s1179_s27 = scalar_lea.vmem %s1178_s1, 128  ;;  %p1180_p4 = scmp.lt.s32.totalorder %s1530_s16, %s1178_s1 }
 0x141   : > { %p1176_p2 = pneg %p1175_p13  ;;  %p1181_p6 = scmp.lt.s32.totalorder %s1179_s27, %s1173_s2 }
 0x143   : > { %p1182_p12 = por %p1181_p6, %p1180_p4 }
 0x145   : > { %p1183_p0 = pnand %p1182_p12, %p1176_p2 }
 0x147   : > { %1186 = shalt.err (!%p1183_p0)
}
 0x148   : > { %s1187_s15 = scalar_lea.hbm %s1528_s3, 64  ;;  %s1191_s28 = scalar_lea.hbm %s1641_s8, 128 }
 0x149   : > { %p1188_p3 = scmp.ne.s32.totalorder %s1528_s3, %s1187_s15  ;;  %p1192_p7 = scmp.lt.s32.totalorder %s1528_s3, %s1641_s8 }
 0x14a   : > { %p1193_p11 = scmp.lt.s32.totalorder %s1191_s28, %s1187_s15 }
 0x14b   : > { %p1189_p10 = pnand %p1188_p3, %p1452_p5 }
 0x14c   : > { %p1194_p1 = por %p1193_p11, %p1192_p7 }
 0x14d   : > { %p1190_p8 = pneg %p1189_p10 }
 0x14f   : > { %p1195_p9 = pnand %p1194_p1, %p1190_p8 }
 0x151   : > { %1198 = shalt.err (!%p1195_p9)
}
 0x152   : > { %943 = dma.vmem_to_hbm [thread:$0]  (%p1452_p5), %s1530_s16, 64, %s1528_s3, %s1560_s24   ;;  %v625_v23 = vpop.f32.mrf.mxu0 }
 0x153   : > { %s430_s26 = scalar_lea.vmem [#allocation13], %s1485_s25  ;;  %v626_v24 = vadd.f32 %v883_v21, %v625_v23  ;;  %s1588_s1 = scalar_lea.hbm %s1642_s9, %s1512_s21 }
 0x154   : > { %s686_s19 = sshll.u32 %s430_s26, 4  ;;  %v926_v25 = vpop.f32.mrf.mxu0  ;;  %s1303_s25 = smov [#allocation13]   ;;  %s687_s19 = int_to_ptr.vmem [resolvable:$true] %s686_s19 }
 0x155   : > { %v631_v26 = vpack.c.bf16 %v626_v24, %v626_v24  ;;  %s1199_s27 = scalar_lea.vmem %s687_s19, 64  ;;  %s1203_s16 = sshll.u32 %s1303_s25, 4  ;;  %s1204_s16 = int_to_ptr.vmem [resolvable:$false] %s1203_s16 }
 0x156   : > { %v628_v27 = vpop.f32.mrf.mxu0  ;;  %p1200_p13 = scmp.ne.s32.totalorder %s687_s19, %s1199_s27  ;;  %s1205_s3 = scalar_lea.vmem %s1204_s16, 128 }
 0x157   : > { %632 = vst.msk [vmem:[%s430_s26] sm:$0xf] %vm501_vm2, %v631_v26  ;;  %p1206_p6 = scmp.lt.s32.totalorder %s687_s19, %s1204_s16  ;;  %p1207_p12 = scmp.lt.s32.totalorder %s1205_s3, %s1199_s27 }
 0x158   : > { %v927_v28 = vpop.f32.mrf.mxu0  ;;  %p1201_p2 = pnand %p1200_p13, %p1452_p5 }
 0x159   : > { %p1208_p0 = por %p1207_p12, %p1206_p6 }
 0x15a   : > { %p1202_p4 = pneg %p1201_p2 }
 0x15c   : > { %p1209_p3 = pnand %p1208_p0, %p1202_p4 }
 0x15e   : > { %1212 = shalt.err (!%p1209_p3)
}
 0x15f   : > { %s1213_s21 = scalar_lea.hbm %s1588_s1, 64  ;;  %s1217_s12 = scalar_lea.hbm %s1642_s9, 128 }
 0x160   : > { %p1214_p10 = scmp.ne.s32.totalorder %s1588_s1, %s1213_s21  ;;  %p1218_p11 = scmp.lt.s32.totalorder %s1588_s1, %s1642_s9 }
 0x161   : > { %p1219_p1 = scmp.lt.s32.totalorder %s1217_s12, %s1213_s21 }
 0x162   : > { %p1215_p8 = pnand %p1214_p10, %p1452_p5 }
 0x163   : > { %p1220_p9 = por %p1219_p1, %p1218_p11 }
 0x164   : > { %p1216_p7 = pneg %p1215_p8 }
 0x166   : > { %p1221_p13 = pnand %p1220_p9, %p1216_p7 }
 0x168   : > { %1224 = shalt.err (!%p1221_p13)
}
 0x169   : > { %944 = dma.vmem_to_hbm [thread:$0]  (%p1452_p5), %s687_s19, 64, %s1588_s1, %s1560_s24  }
 0x16a PF: > { %s1669_s18 = sld [smem:[#allocation19_spill]]  ;;  %s698_s26 = sand.u32 1, %s1271_s30  }
 0x16b   : > { %p1671_p4 = scmp.ge.s32.totalorder %s1291_s14, 2  ;;  %s699_s2 = scalar_lea.sflag [#allocation4], %s698_s26 }
 0x170   : > { %p1670_p2 = scmp.ne.s32.totalorder %s1669_s18, 0 }
 0x172   : > { %p963_p6 = pnand %p1671_p4, %p1670_p2 }
 0x174   : > { %p964_p12 = pneg %p963_p6 }
 0x176   : > { %1262 = dma.done.wait (%p964_p12), %s699_s2, 64  }
 0x177   : > { %1264 = vsyncadd (%p964_p12), %s699_s2, 4294967232  ;;  %s1672_s20 = sadd.s32 4294967294, %s1291_s14  }
 0x178   : > { %s707_s27 = sand.u32 1, %s1672_s20  }
 0x179   : > { %s708_s25 = scalar_lea.sflag [#allocation12], %s707_s27 }
 0x17a   : > { %1266 = dma.done.wait (%p964_p12), %s708_s25, 128  }
 0x17b   : > { %1268 = vsyncadd (%p964_p12), %s708_s25, 4294967168  ;;  %s31_s14 = sadd.s32 1, %s1291_s14   ;;  %s1673_s22 = sld [smem:[#allocation20_spill]] }
 0x17c   : > { %p28_p5 = scmp.ge.s32.totalorder %s31_s14, 4   ;;  %s1674_s30 = smov %s1275_s10 }
 0x17d   : > { %s1675_s10 = smov %s1279_s11  ;;  %s1676_s11 = smov %s1464_s29 }
 0x17e   : > { %s1677_s12 = smov %s1287_s13  ;;  %30 = sbr.rel (!%p28_p5) target bundleno = 14 (0xe), region = 137 }
 0x181   : > { %s1678_s13 = smov %s1673_s22 }
 0x183   :  { %722 = vsyncpa [#allocation3], 1 }
 0x184   :  { %724 = vsyncpa [#allocation3 + $0x1], 1 }
 0x185   :  { %725 = vsyncpa [#allocation6], 1 }
 0x186   :  { %726 = vsyncpa [#allocation9], 1 }
 0x187   :  { %727 = vsyncpa [#allocation4], 1 }
 0x188   :  { %729 = vsyncpa [#allocation4 + $0x1], 1 }
 0x189   :  { %730 = vsyncpa [#allocation12], 1 }
 0x18a   :  { %732 = vsyncpa [#allocation12 + $0x1], 1 }

</bundles_post_ra>
